<compile_context>
chip_gen: v7x
topology: tpu7x:2x2x1
jax: 0.10.0
libtpu: 0.0.40
codegen_flags: <defaults>
</compile_context>

<pallas_src>
import jax
import jax.numpy as jnp
from jax.experimental import pallas as pl
from jax.experimental.pallas import tpu as pltpu


def _vmem_capacity_bytes():
    """Physical VMEM of the local chip, with a conservative fallback."""
    try:
        cap = int(getattr(pltpu.get_tpu_info(), "vmem_capacity_bytes"))
        if cap > 0:
            return cap
    except Exception:
        pass
    return 64 * 1024 * 1024  # conservative (v7x per-core VMEM)


def _choose_tiles(N, C, S, itemsize, budget):
    """Pick (tile_n, tile_s).

    Prefer covering all of S in one block (one contiguous DMA per n-tile, no
    tail mask, no accumulator carry); only grow tile_n after S is fully
    covered.  tile_n stays a multiple of 8 (sublane rule for the 2-D output
    blocks) and is capped at N//2 for N>=16 so v7x's two TensorCores both get
    work on the 'parallel' N axis.
    """
    tile_n = N if N <= 8 else 8

    if tile_n * C * S * itemsize <= budget:
        tile_s = S
        if N > 8:
            cap = min(64, max(8, ((N // 2) // 8) * 8)) if N >= 16 else 8
            tn = tile_n
            while tn + 8 <= cap and (tn + 8) * C * S * itemsize <= budget:
                tn += 8
            tile_n = tn
    else:
        tile_s = (budget // max(1, tile_n * C * itemsize)) // 128 * 128
        tile_s = int(min(max(tile_s, 128), S))
        # TODO(synk): add a C-blocking grid axis for very fat channel counts
        # (C >= ~1-2K) so tile_s can stay >= 512 without blowing VMEM.
    return int(tile_n), int(tile_s)


def _make_kernel(s_total, tile_s, need_mask):
    inv_s = 1.0 / float(s_total)

    def kernel(x_ref, w_ref, b_ref, cls_ref, feat_ref, acc_ref):
        # x_ref:   (tile_n, C, tile_s) input feature block (natural layout)
        # w_ref:   (C, Kpad)           fc weight, pre-transposed + zero-padded
        # b_ref:   (1, Kpad)           fc bias, zero-padded
        # cls_ref: (tile_n, Kpad)      classification scores (padded)
        # feat_ref:(tile_n, C)         pooled feature (second return value)
        # acc_ref: (tile_n, C) f32     VMEM scratch accumulator
        s_idx = pl.program_id(1)
        last_s = pl.num_programs(1) - 1

        @pl.when(s_idx == 0)
        def _():
            acc_ref[...] = jnp.zeros_like(acc_ref)

        x = x_ref[...].astype(jnp.float32)  # cast per-tile; accumulate in f32

        if need_mask:
            # Only the last S tile can be partial: gate the iota/compare/select
            # out of the steady-state reduction loop.
            @pl.when(s_idx == last_s)
            def _():
                offs = s_idx * tile_s + jax.lax.broadcasted_iota(
                    jnp.int32, x.shape, dimension=2)
                xm = jnp.where(offs < s_total, x, 0.0)
                acc_ref[...] += jnp.sum(xm, axis=-1)

            @pl.when(s_idx < last_s)
            def _():
                acc_ref[...] += jnp.sum(x, axis=-1)
        else:
            # AdaptiveAvgPool3d((1,1,1)) == global mean over T*H*W: accumulate
            # the partial sum over this S tile (cross-lane reduce on the XLU).
            acc_ref[...] += jnp.sum(x, axis=-1)

        # TODO(synk): training-mode dropout (PRNG mask + scaling) not
        # implemented; dropout is identity at inference.

        @pl.when(s_idx == last_s)
        def _():
            pooled = acc_ref[...] * inv_s  # (tile_n, C)
            feat_ref[...] = pooled.astype(feat_ref.dtype)
            cls = jnp.dot(pooled, w_ref[...], preferred_element_type=jnp.float32)
            cls = cls + b_ref[...]
            cls_ref[...] = cls.astype(cls_ref.dtype)

    return kernel


def prepare_fc_params(fc_w, fc_b):
    """Hoisted out of the per-call path: pad num_classes to a multiple of 128
    (lane-dense cls store / clean MXU pass) and pre-transpose to (C, Kpad)."""
    K, C = fc_w.shape
    Kpad = ((K + 127) // 128) * 128
    w_ck = jnp.zeros((C, Kpad), jnp.float32).at[:, :K].set(
        jnp.transpose(fc_w, (1, 0)).astype(jnp.float32))
    b_1k = jnp.zeros((1, Kpad), jnp.float32).at[:, :K].set(
        fc_b.astype(jnp.float32))
    return w_ck, b_1k, K


def contrastive_head_forward_prepared(x_ncthw, w_ck, b_1k, K):
    """x_ncthw: (N, C, T, H, W); w_ck: (C, Kpad); b_1k: (1, Kpad)."""
    N, C, T, H, W = x_ncthw.shape
    S = T * H * W
    Kpad = w_ck.shape[1]

    # Free reshape only -- NO transpose (the kernel reduces over the last axis).
    x_ncs = x_ncthw.reshape(N, C, S)
    itemsize = x_ncs.dtype.itemsize

    vmem_cap = _vmem_capacity_bytes()
    budget = vmem_cap // 6          # per live x buffer (Pallas double-buffers)
    tile_n, tile_s = _choose_tiles(N, C, S, itemsize, budget)
    grid = (pl.cdiv(N, tile_n), pl.cdiv(S, tile_s))
    need_mask = (S % tile_s) != 0

    # VMEM need: double-buffered x tiles + (double-buffered) weights/bias +
    # double-buffered outputs + accumulator scratch.
    need = (2 * tile_n * C * tile_s * itemsize
            + 2 * (C + 1) * Kpad * 4
            + 2 * tile_n * (Kpad * 4 + C * max(4, itemsize))
            + tile_n * C * 4)
    vmem_limit = int(min(max(int(need * 1.25), 8 * 1024 * 1024),
                         int(0.75 * vmem_cap)))
    vmem_limit = max(vmem_limit, int(need))  # never below actual need

    cost = pl.CostEstimate(
        flops=N * C * S + 2 * N * C * Kpad,   # pooling adds + FC matmul
        transcendentals=0,
        bytes_accessed=(N * C * S * itemsize + (C + 1) * Kpad * 4
                        + N * Kpad * 4 + N * C * itemsize),
    )

    cls_pad, pooled = pl.pallas_call(
        _make_kernel(S, tile_s, need_mask),
        out_shape=(
            jax.ShapeDtypeStruct((N, Kpad), jnp.float32),
            jax.ShapeDtypeStruct((N, C), x_ncs.dtype),
        ),
        grid_spec=pltpu.PrefetchScalarGridSpec(
            num_scalar_prefetch=0,
            grid=grid,
            in_specs=[
                pl.BlockSpec((tile_n, C, tile_s), lambda n, s: (n, 0, s)),
                pl.BlockSpec((C, Kpad), lambda n, s: (0, 0)),
                pl.BlockSpec((1, Kpad), lambda n, s: (0, 0)),
            ],
            out_specs=(
                pl.BlockSpec((tile_n, Kpad), lambda n, s: (n, 0)),
                pl.BlockSpec((tile_n, C), lambda n, s: (n, 0)),
            ),
            scratch_shapes=[pltpu.VMEM((tile_n, C), jnp.float32)],
        ),
        compiler_params=pltpu.CompilerParams(
            dimension_semantics=("parallel", "arbitrary"),
            vmem_limit_bytes=vmem_limit,
        ),
        cost_estimate=cost,
    )(x_ncs, w_ck, b_1k)

    return cls_pad[:, :K], pooled


def contrastive_head_forward(x_ncthw, fc_w, fc_b):
    """Convenience wrapper: fc_w (num_classes, C) torch layout, fc_b (num_classes,)."""
    w_ck, b_1k, K = prepare_fc_params(fc_w, fc_b)
    return contrastive_head_forward_prepared(x_ncthw, w_ck, b_1k, K)


if __name__ == "__main__":
    # Small, deterministic example consistent with the module.
    num_classes = 8
    in_channels = 32
    N, T, H, W = 2, 4, 4, 4
    init_std = 0.01

    key = jax.random.PRNGKey(0)
    kx, kw, kb = jax.random.split(key, 3)

    x = jax.random.normal(kx, (N, in_channels, T, H, W), dtype=jnp.float32)
    fc_w = init_std * jax.random.normal(
        kw, (num_classes, in_channels), dtype=jnp.float32)
    fc_b = 0.1 * jax.random.normal(kb, (num_classes,), dtype=jnp.float32)

    cls_score, feat = contrastive_head_forward(x, fc_w, fc_b)
    jax.block_until_ready((cls_score, feat))

    # Reference check in plain JAX.
    pooled_ref = jnp.mean(x.reshape(N, in_channels, -1), axis=-1)
    cls_ref = pooled_ref @ fc_w.T + fc_b
    assert cls_score.shape == (N, num_classes), "cls_score shape mismatch"
    assert feat.shape == (N, in_channels), "feat shape mismatch"
    assert jnp.allclose(feat, pooled_ref, atol=1e-5), "pooled feature mismatch"
    assert jnp.allclose(cls_score, cls_ref, atol=1e-5), "cls_score mismatch"

    print("KERNEL_OK")
</pallas_src>

<mosaic_0001>
module attributes {stable_mosaic.version = 11 : i64} {
  func.func @kernel(%arg0: i32, %arg1: i32, %arg2: memref<2x32x64xf32, #tpu.memory_space<vmem>>, %arg3: memref<32x128xf32, #tpu.memory_space<vmem>>, %arg4: memref<1x128xf32, #tpu.memory_space<vmem>>, %arg5: memref<2x128xf32, #tpu.memory_space<vmem>>, %arg6: memref<2x32xf32, #tpu.memory_space<vmem>>, %arg7: memref<2x32xf32, #tpu.memory_space<vmem>>) attributes {dimension_semantics = [#tpu.dimension_semantics<parallel>, #tpu.dimension_semantics<arbitrary>], iteration_bounds = array<i64: 1, 1>, scalar_prefetch = 0 : i64, scratch_operands = 1 : i64, tpu.core_type = #tpu.core_type<tc>, window_params = [{transform_indices = @transform_0, window_bounds = array<i64: 2, 32, 64>}, {pipeline_mode = #tpu.pipeline_mode<synchronous>, transform_indices = @transform_1, window_bounds = array<i64: 32, 128>}, {pipeline_mode = #tpu.pipeline_mode<synchronous>, transform_indices = @transform_2, window_bounds = array<i64: 1, 128>}, {transform_indices = @transform_3, window_bounds = array<i64: 2, 128>}, {transform_indices = @transform_4, window_bounds = array<i64: 2, 32>}]} {
    %c0_i32 = arith.constant 0 : i32
    %0 = arith.cmpi eq, %arg1, %c0_i32 : i32
    %1 = arith.extui %0 : i1 to i32
    %c0_i32_0 = arith.constant 0 : i32
    %2 = arith.cmpi ne, %1, %c0_i32_0 : i32
    scf.if %2 {
      %cst_9 = arith.constant 0.000000e+00 : f32
      %11 = vector.broadcast %cst_9 : f32 to vector<2x32xf32>
      %c0_10 = arith.constant 0 : index
      %c0_11 = arith.constant 0 : index
      %12 = vector.load %arg7[%c0_10, %c0_11] : memref<2x32xf32, #tpu.memory_space<vmem>>, vector<2x32xf32>
      tpu.vector_store %arg7[%c0_10, %c0_11], %11 {strides = array<i32>} : memref<2x32xf32, #tpu.memory_space<vmem>>, vector<2x32xf32>,
    } else {
    }
    %c0 = arith.constant 0 : index
    %c0_1 = arith.constant 0 : index
    %c0_2 = arith.constant 0 : index
    %3 = vector.load %arg2[%c0, %c0_1, %c0_2] : memref<2x32x64xf32, #tpu.memory_space<vmem>>, vector<2x32x64xf32>
    %c0_3 = arith.constant 0 : index
    %c0_4 = arith.constant 0 : index
    %4 = vector.load %arg7[%c0_3, %c0_4] : memref<2x32xf32, #tpu.memory_space<vmem>>, vector<2x32xf32>
    %cst = arith.constant dense<0.000000e+00> : vector<2x32xf32>
    %5 = vector.multi_reduction <add>, %3, %cst [2] : vector<2x32x64xf32> to vector<2x32xf32>
    %6 = arith.addf %4, %5 : vector<2x32xf32>
    %c0_5 = arith.constant 0 : index
    %c0_6 = arith.constant 0 : index
    %7 = vector.load %arg7[%c0_5, %c0_6] : memref<2x32xf32, #tpu.memory_space<vmem>>, vector<2x32xf32>
    tpu.vector_store %arg7[%c0_5, %c0_6], %6 {strides = array<i32>} : memref<2x32xf32, #tpu.memory_space<vmem>>, vector<2x32xf32>,
    %c0_i32_7 = arith.constant 0 : i32
    %8 = arith.cmpi eq, %arg1, %c0_i32_7 : i32
    %9 = arith.extui %8 : i1 to i32
    %c0_i32_8 = arith.constant 0 : i32
    %10 = arith.cmpi ne, %9, %c0_i32_8 : i32
    scf.if %10 {
      %c0_9 = arith.constant 0 : index
      %c0_10 = arith.constant 0 : index
      %11 = vector.load %arg7[%c0_9, %c0_10] : memref<2x32xf32, #tpu.memory_space<vmem>>, vector<2x32xf32>
      %cst_11 = arith.constant 1.562500e-02 : f32
      %12 = vector.broadcast %cst_11 : f32 to vector<2x32xf32>
      %13 = arith.mulf %11, %12 : vector<2x32xf32>
      %c0_12 = arith.constant 0 : index
      %c0_13 = arith.constant 0 : index
      %14 = vector.load %arg6[%c0_12, %c0_13] : memref<2x32xf32, #tpu.memory_space<vmem>>, vector<2x32xf32>
      tpu.vector_store %arg6[%c0_12, %c0_13], %13 {strides = array<i32>} : memref<2x32xf32, #tpu.memory_space<vmem>>, vector<2x32xf32>,
      %c0_14 = arith.constant 0 : index
      %c0_15 = arith.constant 0 : index
      %15 = vector.load %arg3[%c0_14, %c0_15] : memref<32x128xf32, #tpu.memory_space<vmem>>, vector<32x128xf32>
      %cst_16 = arith.constant dense<0.000000e+00> : vector<2x128xf32>
      %16 = tpu.matmul %13, %15, %cst_16 {dimension_numbers = #tpu.dot_dimension_numbers<[1], [0], [0], [1], [0, 0, 1, 1], [], []>} : vector<2x32xf32>, vector<32x128xf32>, vector<2x128xf32> -> vector<2x128xf32>
      %c0_17 = arith.constant 0 : index
      %c0_18 = arith.constant 0 : index
      %17 = vector.load %arg4[%c0_17, %c0_18] : memref<1x128xf32, #tpu.memory_space<vmem>>, vector<1x128xf32>
      %18 = vector.broadcast %17 : vector<1x128xf32> to vector<2x128xf32>
      %19 = arith.addf %16, %18 : vector<2x128xf32>
      %c0_19 = arith.constant 0 : index
      %c0_20 = arith.constant 0 : index
      %20 = vector.load %arg5[%c0_19, %c0_20] : memref<2x128xf32, #tpu.memory_space<vmem>>, vector<2x128xf32>
      tpu.vector_store %arg5[%c0_19, %c0_20], %19 {strides = array<i32>} : memref<2x128xf32, #tpu.memory_space<vmem>>, vector<2x128xf32>,
    } else {
    }
    return
  }
  func.func @transform_0(%arg0: i32, %arg1: i32) -> (i32, i32, i32) {
    %c0_i32 = arith.constant 0 : i32
    %c0_i32_0 = arith.constant 0 : i32
    return %arg0, %c0_i32, %arg1 : i32, i32, i32
  }
  func.func @transform_1(%arg0: i32, %arg1: i32) -> (i32, i32) {
    %c0_i32 = arith.constant 0 : i32
    %c0_i32_0 = arith.constant 0 : i32
    %c0_i32_1 = arith.constant 0 : i32
    return %c0_i32, %c0_i32_0 : i32, i32
  }
  func.func @transform_2(%arg0: i32, %arg1: i32) -> (i32, i32) {
    %c0_i32 = arith.constant 0 : i32
    %c0_i32_0 = arith.constant 0 : i32
    %c0_i32_1 = arith.constant 0 : i32
    return %c0_i32, %c0_i32_0 : i32, i32
  }
  func.func @transform_3(%arg0: i32, %arg1: i32) -> (i32, i32) {
    %c0_i32 = arith.constant 0 : i32
    %c0_i32_0 = arith.constant 0 : i32
    return %arg0, %c0_i32 : i32, i32
  }
  func.func @transform_4(%arg0: i32, %arg1: i32) -> (i32, i32) {
    %c0_i32 = arith.constant 0 : i32
    %c0_i32_0 = arith.constant 0 : i32
    return %arg0, %c0_i32 : i32, i32
  }
}

</mosaic_0001>

<bundles_post_ra>
// kernel: tpu_custom_call.1
= control target key start
LH: loop header
LB: loop body
LE: loop exit
PB: predicated region body
PF: predicated region fallthrough
CT: control target
= control target key end

     0   :  { %10 = vsyncpa [#allocation4], 0  ;;  %s493_s0 = inlined_call_operand.hbm [shape: f32[2,32,64], index: 0, kind: input, shape index: {}]   ;;  %s494_s1 = inlined_call_operand.hbm [shape: f32[32,128], index: 1, kind: input, shape index: {}]   ;;  %s495_s2 = inlined_call_operand.vmem [shape: f32[1,128], index: 2, kind: input, shape index: {}]   ;;  %s496_s3 = inlined_call_operand.hbm [shape: f32[2,128], index: 3, kind: output, shape index: {0}]   ;;  %s497_s4 = inlined_call_operand.hbm [shape: f32[2,32], index: 4, kind: output, shape index: {1}]  }
   0x1   :  { %11 = vsyncpa [#allocation7], 0 }
   0x2   :  { %12 = vsyncpa [#allocation5], 0 }
   0x3   :  { %13 = vsyncpa [#allocation10], 0  ;;  %s397_s15 = smov [#allocation3]   ;;  %s301_s19 = scalar_lea.hbm %s493_s0, 1024 }
   0x4   :  { %s19_s16 = sshll.u32 %s397_s15, 4  ;;  %p302_p0 = scmp.ne.s32.totalorder %s493_s0, %s301_s19  ;;  %s20_s16 = int_to_ptr.vmem [resolvable:$true] %s19_s16 }
   0x5   :  { %p305_p1 = scmp.lt.u32.totalorder %s301_s19, %s493_s0 }
   0x7   :  { %p307_p2 = pnand %p305_p1, %p302_p0 }
   0x9   :  { %310 = shalt.err (!%p307_p2)
}
   0xa   :  { %s311_s24 = scalar_lea.vmem %s20_s16, 1024  ;;  %p316_p4 = scmp.lt.s32.totalorder %s20_s16, %s20_s16 }
   0xb   :  { %p312_p3 = scmp.ne.s32.totalorder %s20_s16, %s311_s24  ;;  %p317_p5 = scmp.lt.s32.totalorder %s311_s24, %s311_s24 }
   0xd   :  { %p318_p6 = por %p317_p5, %p316_p4 }
   0xf   :  { %p319_p7 = pnand %p318_p6, %p312_p3 }
  0x11   :  { %322 = shalt.err (!%p319_p7)
}
  0x12   :  { %s398_s25 = smov 128   ;;  %s399_s26 = smov 8  }
  0x13   :  { %25 = dma.hbm_to_vmem [thread:$0]  %s493_s0, 1024, %s20_s16, [#allocation4], %s398_s25, %s398_s25, %s399_s26  }
  0x14   :  { %s400_s29 = smov [#allocation6]   ;;  %s323_s7 = scalar_lea.hbm %s494_s1, 512 }
  0x15   :  { %s31_s30 = sshll.u32 %s400_s29, 4  ;;  %p324_p8 = scmp.ne.s32.totalorder %s494_s1, %s323_s7  ;;  %s32_s30 = int_to_ptr.vmem [resolvable:$true] %s31_s30 }
  0x16   :  { %p327_p9 = scmp.lt.u32.totalorder %s323_s7, %s494_s1 }
  0x18   :  { %p329_p10 = pnand %p327_p9, %p324_p8 }
  0x1a   :  { %332 = shalt.err (!%p329_p10)
}
  0x1b   :  { %s333_s12 = scalar_lea.vmem %s32_s30, 512  ;;  %p338_p12 = scmp.lt.s32.totalorder %s32_s30, %s32_s30 }
  0x1c   :  { %p334_p11 = scmp.ne.s32.totalorder %s32_s30, %s333_s12  ;;  %p339_p13 = scmp.lt.s32.totalorder %s333_s12, %s333_s12 }
  0x1e   :  { %p340_p0 = por %p339_p13, %p338_p12 }
  0x20   :  { %p341_p1 = pnand %p340_p0, %p334_p11 }
  0x22   :  { %344 = shalt.err (!%p341_p1)
}
  0x23   :  { %37 = dma.hbm_to_vmem [thread:$0]  %s494_s1, 512, %s32_s30, [#allocation7], %s398_s25, %s398_s25, %s399_s26  }
  0x24   :  { %389 = dma.done.wait [#allocation4], 1024  }
  0x25   :  { %390 = vsyncadd [#allocation4], 4294966272 }
  0x26   :  { %391 = dma.done.wait [#allocation7], 512  }
  0x27   :  { %392 = vsyncadd [#allocation7], 4294966784  ;;  %vm61_vm0 = vcmask 523264   ;;  %v56_v0 = vld [vmem:[#allocation3 + $0x20] sm:$0xff]  ;;  %v57_v2 = vld [vmem:[#allocation3 + $0x28] sm:$0xff]  ;;  %vm50_vm1 = vcmask 254976   ;;  %v94_v24 = vlaneseq }
  0x28   :  { %v52_v1 = vld [vmem:[#allocation3] sm:$0xff]  ;;  %v74_v3 = vsel %vm61_vm0, %v56_v0, 0.0  ;;  %v53_v5 = vld [vmem:[#allocation3 + $0x8] sm:$0xff]  ;;  %v77_v6 = vsel %vm61_vm0, %v57_v2, 0.0  ;;  %v58_v8 = vld [vmem:[#allocation3 + $0x30] sm:$0xff]  ;;  %v401_v16 = vmov 0.0  }
  0x29   :  { %v62_v4 = vsel %vm61_vm0, %v52_v1, 0.0  ;;  %75 = vadd.xlane.f32.xlu1 %v74_v3  ;;  %v65_v7 = vsel %vm61_vm0, %v53_v5, 0.0  ;;  %v54_v9 = vld [vmem:[#allocation3 + $0x10] sm:$0xff]  ;;  %v80_v10 = vsel %vm61_vm0, %v58_v8, 0.0  ;;  %v59_v12 = vld [vmem:[#allocation3 + $0x38] sm:$0xff]  ;;  %v152_v17 = vld [vmem:[#allocation6] sm:$0xff] }
  0x2a   :  { %63 = vadd.xlane.f32.xlu0 %v62_v4  ;;  %v68_v11 = vsel %vm61_vm0, %v54_v9, 0.0  ;;  %v55_v13 = vld [vmem:[#allocation3 + $0x18] sm:$0xff]  ;;  %v83_v14 = vsel %vm61_vm0, %v59_v12, 0.0  ;;  %51 = vst.msk [vmem:[#allocation2] sm:$0x3] %vm50_vm1, %v401_v16  ;;  %v153_v18 = vld [vmem:[#allocation6 + $0x8] sm:$0xff] }
  0x2b   :  { %v71_v15 = vsel %vm61_vm0, %v55_v13, 0.0  ;;  %v154_v19 = vld [vmem:[#allocation6 + $0x10] sm:$0xff]  ;;  %v402_v20 = vmov 0.0|0.0   ;;  %v287_v21 = vpack.c.bf16 %v153_v18, %v152_v17  ;;  %v155_v22 = vld [vmem:[#allocation6 + $0x18] sm:$0xff]  ;;  %vm403_vm2 = vmmov 0   ;;  %s404_s1 = smov [#allocation9]  }
  0x2c   :  { %286 = vmatprep.subr.bf16.mxu0 %v402_v20  ;;  %v290_v23 = vpack.c.bf16 %v155_v22, %v154_v19  ;;  %283 = vmatprep.mubr.msk.f32.mxu0 %vm403_vm2, %v401_v16  ;;  %v95_v25 = vand.u32 127, %v94_v24  ;;  %v97_v30 = vshrl.u32 %v94_v24, 7  ;;  %vm105_vm3 = vcmask 130112   ;;  %s254_s14 = sshll.u32 %s404_s1, 4  ;;  %s255_s14 = int_to_ptr.vmem [resolvable:$true] %s254_s14 }
  0x2d   :  { %78 = vadd.xlane.f32.xlu1 %v77_v6  ;;  %288 = vmatpush3.bf16.msra.mxu0 %v287_v21  ;;  %vm112_vm4 = vcmask 195712   ;;  %vm119_vm5 = vcmask 261312   ;;  %vm140_vm6 = vcmask 1041409   ;;  %vm163_vm7 = vcmask 261120   ;;  %s345_s15 = scalar_lea.vmem %s255_s14, 32  ;;  %p350_p3 = scmp.lt.s32.totalorder %s255_s14, %s255_s14 }
  0x2e   :  { %66 = vadd.xlane.f32.xlu0 %v65_v7  ;;  %289 = vmatprep.subr.bf16.mxu0 %v402_v20  ;;  %v100_v28 = vadd.s32 4294967288, %v95_v25  ;;  %v107_v29 = vadd.s32 4294967280, %v95_v25  ;;  %v114_v34 = vadd.s32 4294967272, %v95_v25  ;;  %v98_v36 = vsub.s32 %v95_v25, %v97_v30  ;;  %p346_p2 = scmp.ne.s32.totalorder %s255_s14, %s345_s15  ;;  %p351_p4 = scmp.lt.s32.totalorder %s345_s15, %s345_s15 }
  0x30   :  { %v103_v33 = vsub.s32 %v100_v28, %v97_v30  ;;  %v110_v35 = vsub.s32 %v107_v29, %v97_v30  ;;  %v117_v41 = vsub.s32 %v114_v34, %v97_v30  ;;  %p352_p5 = por %p351_p4, %p350_p3 }
  0x31   :  { %81 = vadd.xlane.f32.xlu1 %v80_v10  ;;  %291 = vmatpush3.bf16.msra.mxu0 %v290_v23  ;;  %v60_v54 = vld [vmem:[#allocation2] sm:$0x3] }
  0x32   :  { %69 = vadd.xlane.f32.xlu0 %v68_v11  ;;  %p353_p6 = pnand %p352_p5, %p346_p2 }
  0x35   :  { %84 = vadd.xlane.f32.xlu1 %v83_v14 }
  0x36   :  { %72 = vadd.xlane.f32.xlu0 %v71_v15 }
  0xb6   :  { %v76_v26 = vpop.xlane.xlu1 %75 }
  0xb7   :  { %v64_v27 = vpop.xlane.xlu0 %63  ;;  %v124_v44 = vrot.slane %v76_v26, %v98_v36 }
  0xb8   :  { %v99_v45 = vrot.slane %v64_v27, %v98_v36 }
  0xba   :  { %v79_v31 = vpop.xlane.xlu1 %78 }
  0xbb   :  { %v67_v32 = vpop.xlane.xlu0 %66  ;;  %v128_v39 = vrot.slane %v79_v31, %v103_v33 }
  0xbc   :  { %v104_v40 = vrot.slane %v67_v32, %v103_v33 }
  0xbd   :  { %v129_v48 = vsel %vm105_vm3, %v128_v39, %v124_v44 }
  0xbe   :  { %v82_v37 = vpop.xlane.xlu1 %81  ;;  %v106_v49 = vsel %vm105_vm3, %v104_v40, %v99_v45 }
  0xbf   :  { %v70_v38 = vpop.xlane.xlu0 %69  ;;  %v133_v42 = vrot.slane %v82_v37, %v110_v35 }
  0xc0   :  { %v111_v43 = vrot.slane %v70_v38, %v110_v35 }
  0xc1   :  { %v134_v52 = vsel %vm112_vm4, %v133_v42, %v129_v48 }
  0xc2   :  { %v85_v46 = vpop.xlane.xlu1 %84  ;;  %v113_v53 = vsel %vm112_vm4, %v111_v43, %v106_v49 }
  0xc3   :  { %v73_v47 = vpop.xlane.xlu0 %72  ;;  %v138_v50 = vrot.slane %v85_v46, %v117_v41 }
  0xc4   :  { %v118_v51 = vrot.slane %v73_v47, %v117_v41 }
  0xc5   :  { %v139_v55 = vsel %vm119_vm5, %v138_v50, %v134_v52 }
  0xc6   :  { %v120_v56 = vsel %vm119_vm5, %v118_v51, %v113_v53 }
  0xc7   :  { %v141_v57 = vsel %vm140_vm6, %v139_v55, %v120_v56 }
  0xc8   :  { %v143_v58 = vadd.f32 %v141_v57, %v60_v54 }
  0xca   :  { %145 = vst.msk [vmem:[#allocation2] sm:$0x3] %vm50_vm1, %v143_v58 }
  0xd1   :  { %v149_v59 = vld [vmem:[#allocation2] sm:$0x3] }
  0xd2   :  { %v150_v60 = vmul.f32 0.015625, %v149_v59 }
  0xd4   :  { %284 = vmatmul.mubr.msk.f32.vlgmr.msra.gmra.mrb[0].mxu0 %vm163_vm7, %v150_v60  ;;  %151 = vst.msk [vmem:[#allocation9] sm:$0x3] %vm50_vm1, %v150_v60 }
  0xd5   :  { %356 = shalt.err (!%p353_p6)
}
  0xd6   :  { %s357_s18 = scalar_lea.hbm %s497_s4, 32 }
  0xd7   :  { %p358_p7 = scmp.ne.s32.totalorder %s497_s4, %s357_s18  ;;  %p361_p8 = scmp.lt.u32.totalorder %s357_s18, %s497_s4 }
  0xd9   :  { %p363_p9 = pnand %p361_p8, %p358_p7 }
  0xdb   :  { %366 = shalt.err (!%p363_p9)
}
  0xdc   :  { %257 = dma.vmem_to_hbm [thread:$0]  %s255_s14, 32, %s497_s4, [#allocation10]   ;;  %v268_v61 = vld [vmem:[%s495_s2] ss:$0 sm:$0xff] }
  0xdd   :  { %s405_s27 = smov [#allocation8]  }
  0xde   :  { %s244_s28 = sshll.u32 %s405_s27, 4  ;;  %s245_s28 = int_to_ptr.vmem [resolvable:$true] %s244_s28 }
  0xdf   :  { %s367_s29 = scalar_lea.vmem %s245_s28, 32  ;;  %p372_p11 = scmp.lt.s32.totalorder %s245_s28, %s245_s28 }
  0xe0   :  { %p368_p10 = scmp.ne.s32.totalorder %s245_s28, %s367_s29  ;;  %p373_p12 = scmp.lt.s32.totalorder %s367_s29, %s367_s29 }
  0xe2   :  { %p374_p13 = por %p373_p12, %p372_p11 }
  0xe4   :  { %p375_p0 = pnand %p374_p13, %p368_p10 }
 0x1a7   :  { %v233_v62 = vpop.f32.mrb[0].mxu0 }
 0x1a8   :  { %v234_v63 = vadd.f32 %v268_v61, %v233_v62  ;;  %v285_v0 = vpop.f32.mrb[1].mxu0 }
 0x1aa   :  { %237 = vst [vmem:[#allocation8] sm:$0x3] %v234_v63 }
 0x1ab   :  { %378 = shalt.err (!%p375_p0)
}
 0x1ac   :  { %s379_s5 = scalar_lea.hbm %s496_s3, 32 }
 0x1ad   :  { %p380_p1 = scmp.ne.s32.totalorder %s496_s3, %s379_s5  ;;  %p383_p2 = scmp.lt.u32.totalorder %s379_s5, %s496_s3 }
 0x1af   :  { %p385_p3 = pnand %p383_p2, %p380_p1 }
 0x1b1   :  { %388 = shalt.err (!%p385_p3)
}
 0x1b2   :  { %247 = dma.vmem_to_hbm [thread:$0]  %s245_s28, 32, %s496_s3, [#allocation5]  }
 0x1b3   :  { %393 = dma.done.wait [#allocation5], 32  }
 0x1b4   :  { %394 = vsyncadd [#allocation5], 4294967264 }
 0x1b5   :  { %395 = dma.done.wait [#allocation10], 32  }
 0x1b6   :  { %396 = vsyncadd [#allocation10], 4294967264 }
 0x1b7   :  { %264 = vsyncpa [#allocation4], 1 }
 0x1b8   :  { %265 = vsyncpa [#allocation7], 1 }
 0x1b9   :  { %266 = vsyncpa [#allocation5], 1 }
 0x1ba   :  { %267 = vsyncpa [#allocation10], 1 }

</bundles_post_ra>
